<compile_context>
chip_gen: v5e
topology: v5e:2x2
jax: 0.10.0
libtpu: 0.0.40
codegen_flags: <defaults>
</compile_context>

<pallas_src>
import functools

import jax
import jax.numpy as jnp
from jax.experimental import pallas as pl
from jax.experimental.pallas import tpu as pltpu


def _batchnorm1d_kernel(x_ref, o_ref, *, scale, eps):
    # Block is (B, TILE_E): full batch resident, reduction over axis 0 stays in-block.
    x = x_ref[...].astype(jnp.float32)                                   # (B, TILE_E)
    mean = jnp.sum(x, axis=0, keepdims=True) * scale                     # (1, TILE_E)
    centered = x - mean                                                  # (B, TILE_E)
    var = jnp.sum(centered * centered, axis=0, keepdims=True) * scale    # biased var
    inv_std = jax.lax.rsqrt(var + eps)                                   # (1, TILE_E)
    o_ref[...] = (centered * inv_std).astype(o_ref.dtype)


def _pick_tile_e(B, E):
    """Largest lane-dense (multiple-of-128) feature tile whose double-buffered
    in+out blocks stay under a conservative VMEM budget (safe on v5e/v6e/v7x)."""
    lane_dense_e = ((E + 127) // 128) * 128          # minimum lane-dense width
    budget_bytes = 12 * 1024 * 1024                   # < v5e's 16 MiB scoped default
    tile = 128
    for cand in (2048, 1024, 512, 256, 128):
        # 2 arrays (in + out) x 2 pipeline buffers x B x cand x 4 bytes (f32)
        if 4 * B * cand * 4 <= budget_bytes:
            tile = cand
            break
    # Never tile wider than the (padded) feature extent itself.
    return min(tile, lane_dense_e)


def batchnorm1d(x, eps=1e-5):
    """x: (batch, embed) float32. Returns (x - mean) / sqrt(var + eps) per-feature."""
    B, E = x.shape
    tile_e = _pick_tile_e(B, E)
    e_pad = ((E + tile_e - 1) // tile_e) * tile_e

    x_in = x if e_pad == E else jnp.pad(x, ((0, 0), (0, e_pad - E)))

    kernel = functools.partial(_batchnorm1d_kernel, scale=1.0 / B, eps=eps)

    out = pl.pallas_call(
        kernel,
        out_shape=jax.ShapeDtypeStruct((B, e_pad), x.dtype),
        grid_spec=pltpu.PrefetchScalarGridSpec(
            num_scalar_prefetch=0,
            grid=(e_pad // tile_e,),
            in_specs=[pl.BlockSpec((B, tile_e), lambda i: (0, i))],
            out_specs=pl.BlockSpec((B, tile_e), lambda i: (0, i)),
        ),
        compiler_params=pltpu.CompilerParams(
            dimension_semantics=("parallel",),
        ),
    )(x_in)

    if e_pad != E:
        out = out[:, :E]
    return out


class BatchNorm1dModule:
    """Mirror of the PyTorch module: weight/bias are created but unused in forward."""

    def __init__(self, embed_size, eps=1e-5):
        self.eps = eps
        # Deterministic parameter init matching torch.ones / torch.zeros.
        self.weight = jnp.ones((embed_size,), dtype=jnp.float32)
        self.bias = jnp.zeros((embed_size,), dtype=jnp.float32)
        # TODO(synk): weight/bias are never applied in the reference forward, so the
        # kernel intentionally does not fuse an affine step.

    def __call__(self, x):
        return batchnorm1d(x, eps=self.eps)


if __name__ == "__main__":
    batch_size = 59
    embed_size = 40

    key = jax.random.PRNGKey(0)
    x = jax.random.normal(key, (batch_size, embed_size), dtype=jnp.float32)

    mod = BatchNorm1dModule(embed_size)
    out = mod(x)
    out = jax.block_until_ready(out)

    # Pure-JAX reference check (same semantics as the torch forward).
    mean = jnp.mean(x, axis=0)
    var = jnp.var(x, axis=0)  # biased, matches unbiased=False
    ref = (x - mean) / jnp.sqrt(var + 1e-5)
    assert out.shape == (batch_size, embed_size)
    assert jnp.allclose(out, ref, atol=1e-5, rtol=1e-5)

    # Also exercise a larger, multi-tile shape to validate the tiled/pipelined path.
    x_big = jax.random.normal(jax.random.PRNGKey(1), (256, 3072), dtype=jnp.float32)
    out_big = jax.block_until_ready(batchnorm1d(x_big))
    ref_big = (x_big - jnp.mean(x_big, axis=0)) / jnp.sqrt(jnp.var(x_big, axis=0) + 1e-5)
    assert jnp.allclose(out_big, ref_big, atol=1e-4, rtol=1e-4)

    print("KERNEL_OK")
</pallas_src>

<mosaic_0001>
module attributes {stable_mosaic.version = 11 : i64} {
  func.func @_batchnorm1d_kernel(%arg0: i32, %arg1: memref<59x128xf32, #tpu.memory_space<vmem>>, %arg2: memref<59x128xf32, #tpu.memory_space<vmem>>) attributes {dimension_semantics = [#tpu.dimension_semantics<parallel>], iteration_bounds = array<i64: 1>, scalar_prefetch = 0 : i64, scratch_operands = 0 : i64, tpu.core_type = #tpu.core_type<tc>, window_params = [{transform_indices = @transform_0, window_bounds = array<i64: 59, 128>}, {transform_indices = @transform_1, window_bounds = array<i64: 59, 128>}]} {
    %c0 = arith.constant 0 : index
    %c0_0 = arith.constant 0 : index
    %0 = vector.load %arg1[%c0, %c0_0] : memref<59x128xf32, #tpu.memory_space<vmem>>, vector<59x128xf32>
    %cst = arith.constant dense<0.000000e+00> : vector<128xf32>
    %1 = vector.multi_reduction <add>, %0, %cst [0] : vector<59x128xf32> to vector<128xf32>
    %2 = vector.shape_cast %1 : vector<128xf32> to vector<1x128xf32>
    %cst_1 = arith.constant 0.0169491526 : f32
    %3 = vector.broadcast %cst_1 : f32 to vector<1x128xf32>
    %4 = arith.mulf %2, %3 : vector<1x128xf32>
    %5 = vector.broadcast %4 : vector<1x128xf32> to vector<59x128xf32>
    %6 = arith.subf %0, %5 : vector<59x128xf32>
    %7 = arith.mulf %6, %6 : vector<59x128xf32>
    %cst_2 = arith.constant dense<0.000000e+00> : vector<128xf32>
    %8 = vector.multi_reduction <add>, %7, %cst_2 [0] : vector<59x128xf32> to vector<128xf32>
    %9 = vector.shape_cast %8 : vector<128xf32> to vector<1x128xf32>
    %cst_3 = arith.constant 0.0169491526 : f32
    %10 = vector.broadcast %cst_3 : f32 to vector<1x128xf32>
    %11 = arith.mulf %9, %10 : vector<1x128xf32>
    %cst_4 = arith.constant 9.99999974E-6 : f32
    %12 = vector.broadcast %cst_4 : f32 to vector<1x128xf32>
    %13 = arith.addf %11, %12 : vector<1x128xf32>
    %14 = math.rsqrt %13 : vector<1x128xf32>
    %15 = vector.broadcast %14 : vector<1x128xf32> to vector<59x128xf32>
    %16 = arith.mulf %6, %15 : vector<59x128xf32>
    %c0_5 = arith.constant 0 : index
    %c0_6 = arith.constant 0 : index
    %17 = vector.load %arg2[%c0_5, %c0_6] : memref<59x128xf32, #tpu.memory_space<vmem>>, vector<59x128xf32>
    tpu.vector_store %arg2[%c0_5, %c0_6], %16 {strides = array<i32>} : memref<59x128xf32, #tpu.memory_space<vmem>>, vector<59x128xf32>,
    return
  }
  func.func @transform_0(%arg0: i32) -> (i32, i32) {
    %c0_i32 = arith.constant 0 : i32
    %c0_i32_0 = arith.constant 0 : i32
    return %c0_i32, %arg0 : i32, i32
  }
  func.func @transform_1(%arg0: i32) -> (i32, i32) {
    %c0_i32 = arith.constant 0 : i32
    %c0_i32_0 = arith.constant 0 : i32
    return %c0_i32, %arg0 : i32, i32
  }
}

</mosaic_0001>

<bundles_post_ra>
// kernel: tpu_custom_call.1
= control target key start
LH: loop header
LB: loop body
LE: loop exit
PB: predicated region body
PF: predicated region fallthrough
CT: control target
= control target key end

     0   :  { %6 = vsyncpa [#allocation3], 0  ;;  %s212_s0 = inlined_call_operand.hbm [shape: f32[59,128], index: 0, kind: input, shape index: {}]   ;;  %s213_s1 = inlined_call_operand.hbm [shape: f32[59,128], index: 1, kind: output, shape index: {}]  }
   0x1   :  { %7 = vsyncpa [#allocation4], 0  ;;  %s12_s8 = sshll.u32 %s212_s0, 4  ;;  %s184_s9 = smov [#allocation2]   ;;  %s13_s8 = int_to_ptr.hbm [resolvable:$true] %s12_s8 }
   0x2   :  { %s14_s10 = sshll.u32 %s184_s9, 4  ;;  %s185_s11 = smov 128   ;;  %s15_s10 = int_to_ptr.vmem [resolvable:$true] %s14_s10 }
   0x3   :  { %s186_s12 = smov 8  }
   0x4   :  { %20 = dma.hbm_to_vmem [thread:$0]  %s13_s8, 1024, %s15_s10, [#allocation3], %s185_s11, %s185_s11, %s186_s12  }
   0x5   :  { %180 = dma.done.wait [#allocation3], 1024  }
   0x6   :  { %181 = vsyncadd [#allocation3], 4294966272  ;;  %v25_v0 = vld [vmem:[#allocation2] sm:$0xff]  ;;  %v26_v1 = vld [vmem:[#allocation2 + $0x8] sm:$0xff]  ;;  %vm39_vm0 = vcmask 1042432   ;;  %s187_s0 = smov [#allocation5]  }
   0x7   :  { %v27_v2 = vld [vmem:[#allocation2 + $0x10] sm:$0xff]  ;;  %v33_v3 = vadd.f32 %v26_v1, %v25_v0  ;;  %v28_v4 = vld [vmem:[#allocation2 + $0x18] sm:$0xff]  ;;  %v29_v6 = vld [vmem:[#allocation2 + $0x20] sm:$0xff]  ;;  %s111_s13 = sshll.u32 %s187_s0, 4  ;;  %s113_s16 = sshll.u32 %s213_s1, 4  ;;  %s112_s13 = int_to_ptr.vmem [resolvable:$true] %s111_s13  ;;  %s114_s16 = int_to_ptr.hbm [resolvable:$true] %s113_s16 }
   0x8   :  { %v30_v8 = vld [vmem:[#allocation2 + $0x28] sm:$0xff]  ;;  %v32_v9 = vld [vmem:[#allocation2 + $0x38] sm:$0x7]  ;;  %v31_v11 = vld [vmem:[#allocation2 + $0x30] sm:$0xff] }
   0x9   :  { %v34_v5 = vadd.f32 %v33_v3, %v27_v2  ;;  %v40_v13 = vsel %vm39_vm0, %v32_v9, 0.0 }
   0xb   :  { %v35_v7 = vadd.f32 %v34_v5, %v28_v4 }
   0xd   :  { %v36_v10 = vadd.f32 %v35_v7, %v29_v6 }
   0xf   :  { %v37_v12 = vadd.f32 %v36_v10, %v30_v8 }
  0x11   :  { %v38_v14 = vadd.f32 %v37_v12, %v31_v11 }
  0x13   :  { %v41_v15 = vadd.f32 %v40_v13, %v38_v14 }
  0x15   :  { %v42_v16 = vrot.slane %v41_v15, 4 }
  0x17   :  { %v43_v17 = vadd.f32 %v42_v16, %v41_v15 }
  0x19   :  { %v44_v18 = vrot.slane %v43_v17, 2 }
  0x1b   :  { %v45_v19 = vadd.f32 %v44_v18, %v43_v17 }
  0x1d   :  { %v46_v20 = vrot.slane %v45_v19, 1 }
  0x1f   :  { %v47_v21 = vadd.f32 %v46_v20, %v45_v19 }
  0x21   :  { %v48_v22 = vmul.f32 0.016949153, %v47_v21 }
  0x23   :  { %v49_v23 = vsub.f32 %v25_v0, %v48_v22  ;;  %v50_v24 = vsub.f32 %v26_v1, %v48_v22  ;;  %v51_v25 = vsub.f32 %v27_v2, %v48_v22  ;;  %v52_v26 = vsub.f32 %v28_v4, %v48_v22 }
  0x24   :  { %v53_v27 = vsub.f32 %v29_v6, %v48_v22  ;;  %v54_v31 = vsub.f32 %v30_v8, %v48_v22  ;;  %v56_v34 = vsub.f32 %v32_v9, %v48_v22  ;;  %v55_v35 = vsub.f32 %v31_v11, %v48_v22 }
  0x25   :  { %v57_v28 = vmul.f32 %v49_v23, %v49_v23  ;;  %v58_v29 = vmul.f32 %v50_v24, %v50_v24  ;;  %v59_v30 = vmul.f32 %v51_v25, %v51_v25  ;;  %v60_v32 = vmul.f32 %v52_v26, %v52_v26 }
  0x26   :  { %v61_v36 = vmul.f32 %v53_v27, %v53_v27  ;;  %v62_v38 = vmul.f32 %v54_v31, %v54_v31  ;;  %v64_v40 = vmul.f32 %v56_v34, %v56_v34  ;;  %v63_v41 = vmul.f32 %v55_v35, %v55_v35 }
  0x27   :  { %v65_v33 = vadd.f32 %v58_v29, %v57_v28 }
  0x28   :  { %v71_v44 = vsel %vm39_vm0, %v64_v40, 0.0 }
  0x29   :  { %v66_v37 = vadd.f32 %v65_v33, %v59_v30 }
  0x2b   :  { %v67_v39 = vadd.f32 %v66_v37, %v60_v32 }
  0x2d   :  { %v68_v42 = vadd.f32 %v67_v39, %v61_v36 }
  0x2f   :  { %v69_v43 = vadd.f32 %v68_v42, %v62_v38 }
  0x31   :  { %v70_v45 = vadd.f32 %v69_v43, %v63_v41 }
  0x33   :  { %v72_v46 = vadd.f32 %v71_v44, %v70_v45 }
  0x35   :  { %v73_v47 = vrot.slane %v72_v46, 4 }
  0x37   :  { %v74_v48 = vadd.f32 %v73_v47, %v72_v46 }
  0x39   :  { %v75_v49 = vrot.slane %v74_v48, 2 }
  0x3b   :  { %v76_v50 = vadd.f32 %v75_v49, %v74_v48 }
  0x3d   :  { %v77_v51 = vrot.slane %v76_v50, 1 }
  0x3f   :  { %v78_v52 = vadd.f32 %v77_v51, %v76_v50 }
  0x41   :  { %v79_v53 = vmul.f32 0.016949153, %v78_v52 }
  0x43   :  { %v80_v54 = vadd.f32 1e-05, %v79_v53 }
  0x45   :  { %130 = vrsqrt.f32 %v80_v54  ;;  %vm87_vm1 = vweird.f32 %v80_v54 }
  0x4b   :  { %v131_v55 = vpop.eup %130 }
  0x4c   :  { %v82_v56 = vmul.f32 %v131_v55, %v80_v54  ;;  %vm88_vm2 = vweird.f32 %v131_v55 }
  0x4d   :  { %vm89_vm3 = vmor %vm87_vm1, %vm88_vm2 }
  0x4e   :  { %v83_v57 = vmul.f32 %v131_v55, %v82_v56 }
  0x50   :  { %v84_v58 = vmul.f32 0.5, %v83_v57 }
  0x52   :  { %v85_v59 = vsub.f32 1.5, %v84_v58 }
  0x54   :  { %v86_v60 = vmul.f32 %v131_v55, %v85_v59 }
  0x56   :  { %v90_v61 = vsel %vm89_vm3, %v131_v55, %v86_v60 }
  0x57   :  { %v91_v62 = vmul.f32 %v90_v61, %v49_v23  ;;  %v92_v63 = vmul.f32 %v90_v61, %v50_v24  ;;  %v93_v0 = vmul.f32 %v90_v61, %v51_v25  ;;  %v94_v1 = vmul.f32 %v90_v61, %v52_v26 }
  0x58   :  { %v95_v2 = vmul.f32 %v90_v61, %v53_v27  ;;  %v96_v3 = vmul.f32 %v90_v61, %v54_v31  ;;  %v97_v4 = vmul.f32 %v90_v61, %v55_v35  ;;  %v98_v5 = vmul.f32 %v90_v61, %v56_v34 }
  0x59   :  { %99 = vst [vmem:[#allocation5] sm:$0xff] %v91_v62 }
  0x5a   :  { %100 = vst [vmem:[#allocation5 + $0x8] sm:$0xff] %v92_v63 }
  0x5b   :  { %101 = vst [vmem:[#allocation5 + $0x10] sm:$0xff] %v93_v0 }
  0x5c   :  { %102 = vst [vmem:[#allocation5 + $0x18] sm:$0xff] %v94_v1 }
  0x5d   :  { %103 = vst [vmem:[#allocation5 + $0x20] sm:$0xff] %v95_v2 }
  0x5e   :  { %104 = vst [vmem:[#allocation5 + $0x28] sm:$0xff] %v96_v3 }
  0x5f   :  { %105 = vst [vmem:[#allocation5 + $0x30] sm:$0xff] %v97_v4 }
  0x60   :  { %106 = vst [vmem:[#allocation5 + $0x38] sm:$0x7] %v98_v5 }
  0x61   :  { %119 = dma.vmem_to_hbm [thread:$0]  %s112_s13, 1024, %s114_s16, [#allocation4], %s185_s11, %s185_s11, %s186_s12  }
  0x62   :  { %182 = dma.done.wait [#allocation4], 1024  }
  0x63   :  { %183 = vsyncadd [#allocation4], 4294966272 }
  0x64   :  { %124 = vsyncpa [#allocation3], 1 }
  0x65   :  { %125 = vsyncpa [#allocation4], 1 }

</bundles_post_ra>
